<compile_context>
chip_gen: v5e
topology: v5e:2x2
jax: 0.10.0
libtpu: 0.0.40
codegen_flags: <defaults>
</compile_context>

<pallas_src>
import jax
import jax.numpy as jnp
from jax.experimental import pallas as pl
from jax.experimental.pallas import tpu as pltpu


def _round_up(x, m):
    return (x + m - 1) // m * m


def _mapnet_kernel(x_ref, w1_ref, w2_ref, o_ref):
    """One row tile: out = gelu(x @ W1) @ W2 + x (f32 accumulate, native-dtype MXU)."""
    x = x_ref[...]                                   # [TM, H]   (f32 or bf16)
    w1 = w1_ref[...]                                 # [H, MID]  resident
    w2 = w2_ref[...]                                 # [MID, H]  resident

    h = jnp.dot(x, w1, preferred_element_type=jnp.float32)        # [TM, MID] f32 acc
    h = jax.nn.gelu(h)                                            # f32 on VPU/EUP
    delta = jnp.dot(h.astype(w2.dtype), w2,
                    preferred_element_type=jnp.float32)           # [TM, H] f32 acc

    o_ref[...] = (delta + x.astype(jnp.float32)).astype(o_ref.dtype)


def mapnet_forward(doc_rep, mask, w1, w2, *, row_tile=None):
    """doc_rep: [B, S, H]; mask: [B, S] (unused, matching the torch forward).

    w1: [H, MID], w2: [MID, H] (already [in, out], i.e. torch Linear.weight.T).
    """
    del mask  # forward() ignores the mask for the returned value
    B, S, H = doc_rep.shape
    Hin, MID = w1.shape
    assert Hin == H and w2.shape == (MID, H)

    rows = B * S
    compute_dtype = doc_rep.dtype
    itemsize = jnp.dtype(compute_dtype).itemsize

    # Lane-align H / MID once in the wrapper (padding with zeros is exact).
    Hp = _round_up(H, 128)
    MIDp = _round_up(MID, 128)

    # Row tile: stream rows so the pipeline has something to overlap; keep it
    # sublane/MXU aligned and sized so the total VMEM footprint (resident
    # weights + double-buffered x/out + f32 intermediates) fits well under the
    # smallest per-core VMEM (64 MiB on v7x).  Sweep via `row_tile=` if needed.
    if row_tile is None:
        tm = 512 if rows >= 512 else _round_up(rows, 8)
        weights_bytes = 2 * Hp * MIDp * itemsize
        budget = 48 * 1024 * 1024 - weights_bytes
        per_row = 2 * 2 * Hp * itemsize + 4 * (MIDp + Hp)   # x/out dbl-buf + f32 temps
        while tm > 64 and tm * per_row > budget:
            tm //= 2
    else:
        tm = _round_up(row_tile, 8)
    rows_p = _round_up(rows, tm)

    x2d = doc_rep.reshape(rows, H)
    if (rows_p, Hp) != (rows, H):
        x2d = jnp.pad(x2d, ((0, rows_p - rows), (0, Hp - H)))

    w1p = w1.astype(compute_dtype)
    w2p = w2.astype(compute_dtype)
    if (Hp, MIDp) != (H, MID):
        w1p = jnp.pad(w1p, ((0, Hp - H), (0, MIDp - MID)))
        w2p = jnp.pad(w2p, ((0, MIDp - MID), (0, Hp - H)))

    # VMEM budget: resident weights (single-buffered) + double-buffered x/out
    # tiles + f32 intermediates, with headroom.
    vmem_needed = (
        2 * Hp * MIDp * itemsize          # W1 + W2, single-buffered
        + 2 * 2 * tm * Hp * itemsize      # x / out tiles, double-buffered
        + tm * MIDp * 4 + tm * Hp * 4     # f32 gelu / delta intermediates
    )
    vmem_limit = int(min(96 * 1024 * 1024,
                         max(32 * 1024 * 1024, (vmem_needed * 5) // 4)))

    cost = pl.CostEstimate(
        flops=2 * 2 * rows_p * Hp * MIDp,                       # two matmuls
        transcendentals=rows_p * MIDp,                          # gelu
        bytes_accessed=2 * rows_p * Hp * itemsize + 2 * Hp * MIDp * itemsize,
    )

    out2d = pl.pallas_call(
        _mapnet_kernel,
        out_shape=jax.ShapeDtypeStruct((rows_p, Hp), compute_dtype),
        grid_spec=pltpu.PrefetchScalarGridSpec(
            num_scalar_prefetch=0,
            grid=(rows_p // tm,),
            in_specs=[
                pl.BlockSpec((tm, Hp), lambda i: (i, 0)),       # x row tile (streamed)
                pl.BlockSpec((Hp, MIDp), lambda i: (0, 0),
                             pipeline_mode=pl.Buffered(1)),     # W1 resident, single-buffered
                pl.BlockSpec((MIDp, Hp), lambda i: (0, 0),
                             pipeline_mode=pl.Buffered(1)),     # W2 resident, single-buffered
            ],
            out_specs=pl.BlockSpec((tm, Hp), lambda i: (i, 0)),
        ),
        compiler_params=pltpu.CompilerParams(
            dimension_semantics=("parallel",),
            vmem_limit_bytes=vmem_limit,
        ),
        cost_estimate=cost,
    )(x2d, w1p, w2p)

    # TODO(synk): if H*MID grows past the VMEM budget (e.g. H>=8192 on v7x),
    # add a grid axis over MID marked "arbitrary" with an f32 accumulator
    # instead of keeping both weights fully resident.
    return out2d[:rows, :H].reshape(B, S, H)


def init_mapnet_params(key, hidden_size, mid_ratio=2, init_std=0.02,
                       dtype=jnp.float32):
    """Deterministic synthetic init matching MLP(hidden, hidden, mid, std=0.02, bias=False)."""
    mid = int(hidden_size * mid_ratio)
    k1, k2 = jax.random.split(key)
    # stored as [in, out] so the kernel does x @ W directly
    w1 = (init_std * jax.random.normal(k1, (hidden_size, mid))).astype(dtype)
    w2 = (init_std * jax.random.normal(k2, (mid, hidden_size))).astype(dtype)
    return w1, w2


if __name__ == "__main__":
    # small shapes consistent with the module: batch=2, seq=8, hidden=32, mid=64
    B, S, H = 2, 8, 32
    key = jax.random.PRNGKey(0)
    k_x, k_p = jax.random.split(key)

    doc_rep = jax.random.normal(k_x, (B, S, H), dtype=jnp.float32)
    mask = jnp.ones((B, S), dtype=jnp.float32)  # unused by forward, kept for API parity
    w1, w2 = init_mapnet_params(k_p, H, mid_ratio=2)

    out = mapnet_forward(doc_rep, mask, w1, w2)
    out = jax.block_until_ready(out)

    # reference check in plain JAX (same gelu variant as the kernel)
    ref = jnp.einsum("bsm,mh->bsh",
                     jax.nn.gelu(jnp.einsum("bsh,hm->bsm", doc_rep, w1)),
                     w2) + doc_rep
    assert out.shape == (B, S, H)
    assert jnp.allclose(out, ref, atol=1e-5, rtol=1e-5)

    print("KERNEL_OK")
</pallas_src>

<mosaic_0001>
module attributes {stable_mosaic.version = 11 : i64} {
  func.func @_mapnet_kernel(%arg0: i32, %arg1: memref<16x128xf32, #tpu.memory_space<vmem>>, %arg2: memref<128x128xf32, #tpu.memory_space<vmem>>, %arg3: memref<128x128xf32, #tpu.memory_space<vmem>>, %arg4: memref<16x128xf32, #tpu.memory_space<vmem>>) attributes {dimension_semantics = [#tpu.dimension_semantics<parallel>], iteration_bounds = array<i64: 1>, scalar_prefetch = 0 : i64, scratch_operands = 0 : i64, tpu.core_type = #tpu.core_type<tc>, window_params = [{transform_indices = @transform_0, window_bounds = array<i64: 16, 128>}, {pipeline_mode = #tpu.pipeline_mode<synchronous>, transform_indices = @transform_1, window_bounds = array<i64: 128, 128>}, {pipeline_mode = #tpu.pipeline_mode<synchronous>, transform_indices = @transform_2, window_bounds = array<i64: 128, 128>}, {transform_indices = @transform_3, window_bounds = array<i64: 16, 128>}]} {
    %c0 = arith.constant 0 : index
    %c0_0 = arith.constant 0 : index
    %0 = vector.load %arg1[%c0, %c0_0] : memref<16x128xf32, #tpu.memory_space<vmem>>, vector<16x128xf32>
    %c0_1 = arith.constant 0 : index
    %c0_2 = arith.constant 0 : index
    %1 = vector.load %arg2[%c0_1, %c0_2] : memref<128x128xf32, #tpu.memory_space<vmem>>, vector<128x128xf32>
    %c0_3 = arith.constant 0 : index
    %c0_4 = arith.constant 0 : index
    %2 = vector.load %arg3[%c0_3, %c0_4] : memref<128x128xf32, #tpu.memory_space<vmem>>, vector<128x128xf32>
    %cst = arith.constant dense<0.000000e+00> : vector<16x128xf32>
    %3 = tpu.matmul %0, %1, %cst {dimension_numbers = #tpu.dot_dimension_numbers<[1], [0], [0], [1], [0, 0, 1, 1], [], []>} : vector<16x128xf32>, vector<128x128xf32>, vector<16x128xf32> -> vector<16x128xf32>
    %4 = arith.mulf %3, %3 : vector<16x128xf32>
    %5 = arith.mulf %3, %4 : vector<16x128xf32>
    %cst_5 = arith.constant 4.471500e-02 : f32
    %6 = vector.broadcast %cst_5 : f32 to vector<16x128xf32>
    %7 = arith.mulf %6, %5 : vector<16x128xf32>
    %8 = arith.addf %3, %7 : vector<16x128xf32>
    %cst_6 = arith.constant 0.797884583 : f32
    %9 = vector.broadcast %cst_6 : f32 to vector<16x128xf32>
    %10 = arith.mulf %9, %8 : vector<16x128xf32>
    %11 = math.tanh %10 : vector<16x128xf32>
    %cst_7 = arith.constant 1.000000e+00 : f32
    %12 = vector.broadcast %cst_7 : f32 to vector<16x128xf32>
    %13 = arith.addf %12, %11 : vector<16x128xf32>
    %cst_8 = arith.constant 5.000000e-01 : f32
    %14 = vector.broadcast %cst_8 : f32 to vector<16x128xf32>
    %15 = arith.mulf %14, %13 : vector<16x128xf32>
    %16 = arith.mulf %3, %15 : vector<16x128xf32>
    %cst_9 = arith.constant dense<0.000000e+00> : vector<16x128xf32>
    %17 = tpu.matmul %16, %2, %cst_9 {dimension_numbers = #tpu.dot_dimension_numbers<[1], [0], [0], [1], [0, 0, 1, 1], [], []>} : vector<16x128xf32>, vector<128x128xf32>, vector<16x128xf32> -> vector<16x128xf32>
    %18 = arith.addf %17, %0 : vector<16x128xf32>
    %c0_10 = arith.constant 0 : index
    %c0_11 = arith.constant 0 : index
    %19 = vector.load %arg4[%c0_10, %c0_11] : memref<16x128xf32, #tpu.memory_space<vmem>>, vector<16x128xf32>
    tpu.vector_store %arg4[%c0_10, %c0_11], %18 {strides = array<i32>} : memref<16x128xf32, #tpu.memory_space<vmem>>, vector<16x128xf32>,
    return
  }
  func.func @transform_0(%arg0: i32) -> (i32, i32) {
    %c0_i32 = arith.constant 0 : i32
    %c0_i32_0 = arith.constant 0 : i32
    return %arg0, %c0_i32 : i32, i32
  }
  func.func @transform_1(%arg0: i32) -> (i32, i32) {
    %c0_i32 = arith.constant 0 : i32
    %c0_i32_0 = arith.constant 0 : i32
    %c0_i32_1 = arith.constant 0 : i32
    return %c0_i32, %c0_i32_0 : i32, i32
  }
  func.func @transform_2(%arg0: i32) -> (i32, i32) {
    %c0_i32 = arith.constant 0 : i32
    %c0_i32_0 = arith.constant 0 : i32
    %c0_i32_1 = arith.constant 0 : i32
    return %c0_i32, %c0_i32_0 : i32, i32
  }
  func.func @transform_3(%arg0: i32) -> (i32, i32) {
    %c0_i32 = arith.constant 0 : i32
    %c0_i32_0 = arith.constant 0 : i32
    return %arg0, %c0_i32 : i32, i32
  }
}

</mosaic_0001>

<bundles_post_ra>
// kernel: tpu_custom_call.1
= control target key start
LH: loop header
LB: loop body
LE: loop exit
PB: predicated region body
PF: predicated region fallthrough
CT: control target
= control target key end

     0   :  { %8 = vsyncpa [#allocation3], 0  ;;  %s384_s0 = inlined_call_operand.hbm [shape: f32[16,128], index: 0, kind: input, shape index: {}]   ;;  %s385_s1 = inlined_call_operand.hbm [shape: f32[128,128], index: 1, kind: input, shape index: {}]   ;;  %s386_s2 = inlined_call_operand.hbm [shape: f32[128,128], index: 2, kind: input, shape index: {}]   ;;  %s387_s3 = inlined_call_operand.hbm [shape: f32[16,128], index: 3, kind: output, shape index: {}]  }
   0x1   :  { %9 = vsyncpa [#allocation6], 0 }
   0x2   :  { %10 = vsyncpa [#allocation4], 0  ;;  %s28_s14 = sshll.u32 %s385_s1, 4  ;;  %s326_s15 = smov [#allocation5]   ;;  %s29_s14 = int_to_ptr.hbm [resolvable:$true] %s28_s14 }
   0x3   :  { %s30_s16 = sshll.u32 %s326_s15, 4  ;;  %s15_s19 = sshll.u32 %s384_s0, 4  ;;  %s31_s16 = int_to_ptr.vmem [resolvable:$true] %s30_s16  ;;  %s16_s19 = int_to_ptr.hbm [resolvable:$true] %s15_s19 }
   0x4   :  { %s327_s20 = smov 128   ;;  %s328_s21 = smov 8  }
   0x5   :  { %36 = dma.hbm_to_vmem [thread:$0]  %s29_s14, 2048, %s31_s16, [#allocation6], %s327_s20, %s327_s20, %s328_s21  }
   0x6   :  { %s329_s22 = smov [#allocation2]   ;;  %s41_s1 = sshll.u32 %s386_s2, 4  ;;  %s42_s1 = int_to_ptr.hbm [resolvable:$true] %s41_s1 }
   0x7   :  { %s17_s23 = sshll.u32 %s329_s22, 4  ;;  %s330_s0 = smov [#allocation7]   ;;  %s18_s23 = int_to_ptr.vmem [resolvable:$true] %s17_s23 }
   0x8   :  { %23 = dma.hbm_to_vmem [thread:$0]  %s16_s19, 256, %s18_s23, [#allocation3], %s327_s20, %s327_s20, %s328_s21  }
   0x9   :  { %s43_s26 = sshll.u32 %s330_s0, 4  ;;  %s44_s26 = int_to_ptr.vmem [resolvable:$true] %s43_s26 }
   0xa   :  { %49 = dma.hbm_to_vmem [thread:$0]  %s42_s1, 2048, %s44_s26, [#allocation6], %s327_s20, %s327_s20, %s328_s21  }
   0xb   :  { %320 = dma.done.wait [#allocation3], 256  }
   0xc   :  { %321 = vsyncadd [#allocation3], 4294967040 }
   0xd   :  { %322 = dma.done.wait [#allocation6], 4096  }
   0xe   :  { %323 = vsyncadd [#allocation6], 4294963200  ;;  %v79_v0 = vld [vmem:[#allocation5 + $0x78] sm:$0xff]  ;;  %v78_v1 = vld [vmem:[#allocation5 + $0x70] sm:$0xff]  ;;  %s331_s2 = smov [#allocation8]   ;;  %s168_s30 = sshll.u32 %s387_s3, 4  ;;  %s169_s30 = int_to_ptr.hbm [resolvable:$true] %s168_s30 }
   0xf   :  { %96 = vmatpush.msra.mxu0 %v79_v0  ;;  %182 = vmatpush.msra.mxu2 %v79_v0  ;;  %v77_v2 = vld [vmem:[#allocation5 + $0x68] sm:$0xff]  ;;  %v76_v3 = vld [vmem:[#allocation5 + $0x60] sm:$0xff]  ;;  %v75_v4 = vld [vmem:[#allocation5 + $0x58] sm:$0xff]  ;;  %s166_s27 = sshll.u32 %s331_s2, 4  ;;  %s167_s27 = int_to_ptr.vmem [resolvable:$true] %s166_s27 }
  0x10   :  { %v95_v5 = vld [vmem:[#allocation7 + $0x78] sm:$0xff]  ;;  %v94_v6 = vld [vmem:[#allocation7 + $0x70] sm:$0xff]  ;;  %v93_v8 = vld [vmem:[#allocation7 + $0x68] sm:$0xff] }
  0x11   :  { %97 = vmatpush.msra.mxu0 %v78_v1  ;;  %183 = vmatpush.msra.mxu2 %v78_v1  ;;  %v74_v7 = vld [vmem:[#allocation5 + $0x50] sm:$0xff]  ;;  %v73_v9 = vld [vmem:[#allocation5 + $0x48] sm:$0xff]  ;;  %v92_v10 = vld [vmem:[#allocation7 + $0x60] sm:$0xff] }
  0x12   :  { %137 = vmatpush.msra.mxu1 %v95_v5  ;;  %198 = vmatpush.msra.mxu3 %v95_v5  ;;  %v72_v11 = vld [vmem:[#allocation5 + $0x40] sm:$0xff]  ;;  %v71_v12 = vld [vmem:[#allocation5 + $0x38] sm:$0xff]  ;;  %v70_v13 = vld [vmem:[#allocation5 + $0x30] sm:$0xff] }
  0x13   :  { %98 = vmatpush.msra.mxu0 %v77_v2  ;;  %184 = vmatpush.msra.mxu2 %v77_v2  ;;  %v69_v14 = vld [vmem:[#allocation5 + $0x28] sm:$0xff]  ;;  %v68_v15 = vld [vmem:[#allocation5 + $0x20] sm:$0xff]  ;;  %v67_v16 = vld [vmem:[#allocation5 + $0x18] sm:$0xff] }
  0x14   :  { %138 = vmatpush.msra.mxu1 %v94_v6  ;;  %199 = vmatpush.msra.mxu3 %v94_v6  ;;  %v66_v17 = vld [vmem:[#allocation5 + $0x10] sm:$0xff]  ;;  %v65_v18 = vld [vmem:[#allocation5 + $0x8] sm:$0xff]  ;;  %v64_v19 = vld [vmem:[#allocation5] sm:$0xff] }
  0x15   :  { %99 = vmatpush.msra.mxu0 %v76_v3  ;;  %185 = vmatpush.msra.mxu2 %v76_v3  ;;  %v370_v20 = vld [vmem:[#allocation2] sm:$0xff]  ;;  %v372_v21 = vld [vmem:[#allocation2 + $0x8] sm:$0xff]  ;;  %v89_v24 = vld [vmem:[#allocation7 + $0x48] sm:$0xff] }
  0x16   :  { %139 = vmatpush.msra.mxu1 %v93_v8  ;;  %200 = vmatpush.msra.mxu3 %v93_v8  ;;  %v91_v22 = vld [vmem:[#allocation7 + $0x58] sm:$0xff]  ;;  %v90_v23 = vld [vmem:[#allocation7 + $0x50] sm:$0xff]  ;;  %v88_v25 = vld [vmem:[#allocation7 + $0x40] sm:$0xff] }
  0x17   :  { %100 = vmatpush.msra.mxu0 %v75_v4  ;;  %186 = vmatpush.msra.mxu2 %v75_v4  ;;  %v87_v26 = vld [vmem:[#allocation7 + $0x38] sm:$0xff]  ;;  %v86_v27 = vld [vmem:[#allocation7 + $0x30] sm:$0xff]  ;;  %v85_v28 = vld [vmem:[#allocation7 + $0x28] sm:$0xff] }
  0x18   :  { %140 = vmatpush.msra.mxu1 %v92_v10  ;;  %201 = vmatpush.msra.mxu3 %v92_v10  ;;  %v84_v29 = vld [vmem:[#allocation7 + $0x20] sm:$0xff]  ;;  %v83_v30 = vld [vmem:[#allocation7 + $0x18] sm:$0xff]  ;;  %v82_v31 = vld [vmem:[#allocation7 + $0x10] sm:$0xff] }
  0x19   :  { %101 = vmatpush.msra.mxu0 %v74_v7  ;;  %187 = vmatpush.msra.mxu2 %v74_v7  ;;  %v81_v32 = vld [vmem:[#allocation7 + $0x8] sm:$0xff]  ;;  %v80_v33 = vld [vmem:[#allocation7] sm:$0xff] }
  0x1a   :  { %141 = vmatpush.msra.mxu1 %v91_v22  ;;  %202 = vmatpush.msra.mxu3 %v91_v22 }
  0x1b   :  { %102 = vmatpush.msra.mxu0 %v73_v9  ;;  %188 = vmatpush.msra.mxu2 %v73_v9 }
  0x1c   :  { %142 = vmatpush.msra.mxu1 %v90_v23  ;;  %203 = vmatpush.msra.mxu3 %v90_v23 }
  0x1d   :  { %103 = vmatpush.msra.mxu0 %v72_v11  ;;  %189 = vmatpush.msra.mxu2 %v72_v11 }
  0x1e   :  { %143 = vmatpush.msra.mxu1 %v89_v24  ;;  %204 = vmatpush.msra.mxu3 %v89_v24 }
  0x1f   :  { %104 = vmatpush.msra.mxu0 %v71_v12  ;;  %190 = vmatpush.msra.mxu2 %v71_v12 }
  0x20   :  { %144 = vmatpush.msra.mxu1 %v88_v25  ;;  %205 = vmatpush.msra.mxu3 %v88_v25 }
  0x21   :  { %105 = vmatpush.msra.mxu0 %v70_v13  ;;  %191 = vmatpush.msra.mxu2 %v70_v13 }
  0x22   :  { %145 = vmatpush.msra.mxu1 %v87_v26  ;;  %206 = vmatpush.msra.mxu3 %v87_v26 }
  0x23   :  { %106 = vmatpush.msra.mxu0 %v69_v14  ;;  %192 = vmatpush.msra.mxu2 %v69_v14 }
  0x24   :  { %146 = vmatpush.msra.mxu1 %v86_v27  ;;  %207 = vmatpush.msra.mxu3 %v86_v27 }
  0x25   :  { %107 = vmatpush.msra.mxu0 %v68_v15  ;;  %193 = vmatpush.msra.mxu2 %v68_v15 }
  0x26   :  { %147 = vmatpush.msra.mxu1 %v85_v28  ;;  %208 = vmatpush.msra.mxu3 %v85_v28 }
  0x27   :  { %108 = vmatpush.msra.mxu0 %v67_v16  ;;  %194 = vmatpush.msra.mxu2 %v67_v16 }
  0x28   :  { %148 = vmatpush.msra.mxu1 %v84_v29  ;;  %209 = vmatpush.msra.mxu3 %v84_v29 }
  0x29   :  { %109 = vmatpush.msra.mxu0 %v66_v17  ;;  %195 = vmatpush.msra.mxu2 %v66_v17 }
  0x2a   :  { %149 = vmatpush.msra.mxu1 %v83_v30  ;;  %210 = vmatpush.msra.mxu3 %v83_v30 }
  0x2b   :  { %110 = vmatpush.msra.mxu0 %v65_v18  ;;  %196 = vmatpush.msra.mxu2 %v65_v18 }
  0x2c   :  { %150 = vmatpush.msra.mxu1 %v82_v31  ;;  %211 = vmatpush.msra.mxu3 %v82_v31 }
  0x2d   :  { %111 = vmatpush.msra.mxu0 %v64_v19  ;;  %197 = vmatpush.msra.mxu2 %v64_v19 }
  0x2e   :  { %112 = vmatmul.f32.vlgmr.msra.gmra.mxu0 %v370_v20  ;;  %115 = vmatmul.f32.vlgmr.msra.gmra.mxu2 %v372_v21 }
  0x2f   :  { %151 = vmatpush.msra.mxu1 %v81_v32  ;;  %212 = vmatpush.msra.mxu3 %v81_v32 }
  0x31   :  { %152 = vmatpush.msra.mxu1 %v80_v33  ;;  %213 = vmatpush.msra.mxu3 %v80_v33 }
  0xab   :  { %v113_v34 = vpop.f32.mrf.mxu0 }
  0xac   :  { %v119_v35 = vmul.f32 %v113_v34, %v113_v34 }
  0xae   :  { %v121_v36 = vmul.f32 %v119_v35, %v113_v34 }
  0xb0   :  { %v123_v37 = vmul.f32 0.044715, %v121_v36 }
  0xb1   :  { %v116_v38 = vpop.f32.mrf.mxu2 }
  0xb2   :  { %v125_v39 = vadd.f32 %v123_v37, %v113_v34  ;;  %v120_v40 = vmul.f32 %v116_v38, %v116_v38 }
  0xb4   :  { %v127_v41 = vmul.f32 0.7978846, %v125_v39  ;;  %v122_v42 = vmul.f32 %v120_v40, %v116_v38 }
  0xb6   :  { %220 = vtanh.f32 %v127_v41  ;;  %v124_v43 = vmul.f32 0.044715, %v122_v42 }
  0xb8   :  { %v126_v44 = vadd.f32 %v124_v43, %v116_v38 }
  0xba   :  { %v128_v45 = vmul.f32 0.7978846, %v126_v44 }
  0xbc   :  { %v221_v46 = vpop.eup %220  ;;  %222 = vtanh.f32 %v128_v45 }
  0xbd   :  { %v131_v47 = vadd.f32 1.0, %v221_v46 }
  0xbf   :  { %v133_v48 = vmul.f32 0.5, %v131_v47 }
  0xc1   :  { %v135_v49 = vmul.f32 %v133_v48, %v113_v34 }
  0xc2   :  { %v223_v50 = vpop.eup %222 }
  0xc3   :  { %153 = vmatmul.f32.vlgmr.msra.gmra.mxu1 %v135_v49  ;;  %v132_v51 = vadd.f32 1.0, %v223_v50 }
  0xc5   :  { %v134_v52 = vmul.f32 0.5, %v132_v51 }
  0xc7   :  { %v136_v53 = vmul.f32 %v134_v52, %v116_v38 }
  0xc9   :  { %156 = vmatmul.f32.vlgmr.msra.gmra.mxu3 %v136_v53 }
 0x140   :  { %v154_v54 = vpop.f32.mrf.mxu1 }
 0x141   :  { %v155_v55 = vadd.f32 %v154_v54, %v370_v20 }
 0x143   :  { %160 = vst [vmem:[#allocation8] sm:$0xff] %v155_v55 }
 0x14c   :  { %v157_v56 = vpop.f32.mrf.mxu3 }
 0x14d   :  { %v158_v57 = vadd.f32 %v157_v56, %v372_v21 }
 0x14f   :  { %161 = vst [vmem:[#allocation8 + $0x8] sm:$0xff] %v158_v57 }
 0x150   :  { %174 = dma.vmem_to_hbm [thread:$0]  %s167_s27, 256, %s169_s30, [#allocation4], %s327_s20, %s327_s20, %s328_s21  }
 0x151   :  { %324 = dma.done.wait [#allocation4], 256  }
 0x152   :  { %325 = vsyncadd [#allocation4], 4294967040 }
 0x153   :  { %179 = vsyncpa [#allocation3], 1 }
 0x154   :  { %180 = vsyncpa [#allocation6], 1 }
 0x155   :  { %181 = vsyncpa [#allocation4], 1 }

</bundles_post_ra>
